<compile_context>
chip_gen: v5e
topology: v5e:2x2
jax: 0.10.0
libtpu: 0.0.40
codegen_flags: <defaults>
</compile_context>

<pallas_src>
import jax
import jax.numpy as jnp
import numpy as np
from jax.experimental import pallas as pl
from jax.experimental.pallas import tpu as pltpu


def _fold_bn(gamma, beta, mean, var, eps=1e-5):
    """Eval-mode BatchNorm -> per-channel (scale, bias)."""
    s = (gamma / jnp.sqrt(var + eps)).astype(jnp.float32)
    b = (beta - mean * s).astype(jnp.float32)
    return s, b


def _band_weights(w, W):
    """Fold the kx taps + left/right zero padding of a 3x3 conv into bands.

    w: (3, 3, Cin, Cout) HWIO weight (BN scale already folded in).
    Returns B of shape (3, W*Cin, W*Cout) such that, with image rows flattened
    channel-minor to width W*Cin,
        out_row[y] = sum_ky  in_row[y + ky - 1] @ B[ky]
    where out-of-image input rows are zero (the top/bottom conv padding).
    """
    KH, KW, Cin, Cout = w.shape
    sel = np.zeros((KW, W, W), np.float32)
    for kx in range(KW):
        for x in range(W):
            xin = x + kx - 1
            if 0 <= xin < W:
                sel[kx, xin, x] = 1.0
    B = jnp.einsum("kax,ykio->yaixo", jnp.asarray(sel), w)
    return B.reshape(KH, W * Cin, W * Cout)


def residual_block(x_nhwc, params, block_n=4):
    N, H, W, Cin = x_nhwc.shape
    Cout = params["w1"].shape[-1]
    Kin = W * Cin                # flattened input-row width
    Nc = W * Cout                # flattened output-row width (lane dim)

    # Nb=4 keeps the batch grid length even (grid=2 at N=8) so v7x's two
    # TensorCores stay balanced.  On single-TC v5e a larger Nb would amortize
    # more per-step overhead, but needs accumulator chunking first (vregs).
    Nb = min(block_n, N)
    assert N % Nb == 0, "batch must divide by the per-step batch tile"
    P = Nb * H                   # rows (= dot M dimension) per grid step
    assert P % 8 == 0, "sublane tiling: Nb*H must be a multiple of 8"

    # ---- host prep: fold BN into weights, build banded per-tap matrices ----
    s1, b1 = _fold_bn(*params["bn1"])
    s2, b2 = _fold_bn(*params["bn2"])
    ssc, bsc = _fold_bn(*params["bnsc"])
    w1f = params["w1"].astype(jnp.float32) * s1              # (3,3,Cin,Cout)
    w2f = params["w2"].astype(jnp.float32) * s2              # (3,3,Cout,Cout)
    wscf = params["wsc"].astype(jnp.float32) * ssc           # (Cin,Cout)

    B1 = _band_weights(w1f, W)                               # (3, Kin, Nc)
    B2 = _band_weights(w2f, W)                               # (3, Nc,  Nc)
    Bsc = jnp.einsum("ax,io->aixo", jnp.eye(W, dtype=jnp.float32), wscf
                     ).reshape(Kin, Nc)                      # block-diag 1x1

    # Fuse the 1x1 shortcut into the conv1 ky=1 tap (they share the LHS).
    B1mid = jnp.concatenate([B1[1], Bsc], axis=-1).astype(jnp.bfloat16)  # (Kin, 2*Nc)
    B1side = jnp.stack([B1[0], B1[2]]).astype(jnp.bfloat16)              # (2, Kin, Nc)
    B2b = B2.astype(jnp.bfloat16)                                        # (3, Nc, Nc)
    bias = jnp.stack([jnp.tile(b1, W), jnp.tile(b2 + bsc, W)])           # (2, Nc) f32

    # Grid-invariant boundary masks for the rolled row taps: mask[0] zeroes
    # the wrap into each image's first row (top zero padding), mask[1] the
    # wrap into each image's last row (bottom zero padding).
    row = np.arange(P) % H
    mask = jnp.asarray(
        np.stack([(row != 0), (row != H - 1)])[:, :, None].astype(np.float32))

    # Activations: row-flattened channel-minor layout, no halo rows, bf16 in
    # HBM (halves activation DMA bytes).  Pure metadata reshape, no pad.
    xr = x_nhwc.reshape(N * H, Kin).astype(jnp.bfloat16)

    def kernel(xr_ref, b1m_ref, b1s_ref, b2_ref, bias_ref, mask_ref, out_ref):
        m_up = mask_ref[0]          # (P,1) f32: 0 at each image's first row
        m_dn = mask_ref[1]          # (P,1) f32: 0 at each image's last row

        x = xr_ref[...]             # (P, Kin) bf16, whole 8-aligned block

        # conv1 (+ fused 1x1 shortcut): three full-block dots sharing LHS x.
        y_mid = jnp.dot(x, b1m_ref[...],
                        preferred_element_type=jnp.float32)   # (P, 2*Nc)
        y_up = jnp.dot(x, b1s_ref[0],
                       preferred_element_type=jnp.float32)    # ky=0 tap
        y_dn = jnp.dot(x, b1s_ref[1],
                       preferred_element_type=jnp.float32)    # ky=2 tap

        # out[y] needs in[y-1]@B[0] and in[y+1]@B[2]; realize the row shifts
        # with sublane rolls of the partial results, masking the circular
        # wrap at image boundaries (that wrap is the conv zero padding).
        acc1 = (y_mid[:, :Nc]
                + m_up * pltpu.roll(y_up, shift=1, axis=0)
                + m_dn * pltpu.roll(y_dn, shift=P - 1, axis=0))
        h = jnp.maximum(acc1 + bias_ref[0:1, :], 0.0)          # BN1 bias + ReLU

        # conv2: same banded scheme, rolling the f32 h then casting to bf16.
        h_bf = h.astype(jnp.bfloat16)
        hu_bf = (m_up * pltpu.roll(h, shift=1, axis=0)).astype(jnp.bfloat16)
        hd_bf = (m_dn * pltpu.roll(h, shift=P - 1, axis=0)).astype(jnp.bfloat16)

        acc2 = y_mid[:, Nc:]                                   # 1x1 shortcut
        acc2 = acc2 + jnp.dot(hu_bf, b2_ref[0], preferred_element_type=jnp.float32)
        acc2 = acc2 + jnp.dot(h_bf, b2_ref[1], preferred_element_type=jnp.float32)
        acc2 = acc2 + jnp.dot(hd_bf, b2_ref[2], preferred_element_type=jnp.float32)

        out_ref[...] = jnp.maximum(acc2 + bias_ref[1:2, :], 0.0
                                   ).astype(out_ref.dtype)

    out_rows = pl.pallas_call(
        kernel,
        out_shape=jax.ShapeDtypeStruct((N * H, Nc), x_nhwc.dtype),
        grid=(N // Nb,),
        in_specs=[
            pl.BlockSpec((P, Kin), lambda t: (t, 0)),          # activations
            pl.BlockSpec((Kin, 2 * Nc), lambda t: (0, 0)),     # conv1 mid + 1x1
            pl.BlockSpec((2, Kin, Nc), lambda t: (0, 0, 0)),   # conv1 side taps
            pl.BlockSpec((3, Nc, Nc), lambda t: (0, 0, 0)),    # conv2 taps
            pl.BlockSpec((2, Nc), lambda t: (0, 0)),           # merged biases
            pl.BlockSpec((2, P, 1), lambda t: (0, 0, 0)),      # boundary masks
        ],
        out_specs=pl.BlockSpec((P, Nc), lambda t: (t, 0)),
        compiler_params=pltpu.CompilerParams(
            dimension_semantics=("parallel",)),
    )(xr, B1mid, B1side, B2b, bias, mask)

    # Output rows are exactly the real image rows: plain metadata reshape.
    return out_rows.reshape(N, H, W, Cout)


def ref_residual_block(x_nhwc, params):
    """Pure-JAX reference (lax.conv, f32) for correctness checking."""
    def bn(x, gamma, beta, mean, var, eps=1e-5):
        return (x - mean) / jnp.sqrt(var + eps) * gamma + beta

    dn = ("NHWC", "HWIO", "NHWC")
    h = jax.lax.conv_general_dilated(x_nhwc, params["w1"], (1, 1), "SAME",
                                     dimension_numbers=dn)
    h = jax.nn.relu(bn(h, *params["bn1"]))
    left = jax.lax.conv_general_dilated(h, params["w2"], (1, 1), "SAME",
                                        dimension_numbers=dn)
    left = bn(left, *params["bn2"])
    sc = jnp.einsum("nhwc,cd->nhwd", x_nhwc, params["wsc"])
    sc = bn(sc, *params["bnsc"])
    return jax.nn.relu(left + sc)


if __name__ == "__main__":
    key = jax.random.PRNGKey(0)
    N, Cin, Cout, H, W = 8, 4, 8, 16, 16
    ks = jax.random.split(key, 8)

    # PyTorch-convention NCHW input, transposed to NHWC for the kernel.
    x_nchw = jax.random.normal(ks[0], (N, Cin, H, W), jnp.float32)
    x = jnp.transpose(x_nchw, (0, 2, 3, 1))

    def bn_params(k, c):
        k1, k2, k3, k4 = jax.random.split(k, 4)
        gamma = 1.0 + 0.1 * jax.random.normal(k1, (c,), jnp.float32)
        beta = 0.1 * jax.random.normal(k2, (c,), jnp.float32)
        mean = 0.1 * jax.random.normal(k3, (c,), jnp.float32)
        var = 1.0 + 0.1 * jnp.abs(jax.random.normal(k4, (c,), jnp.float32))
        return (gamma, beta, mean, var)

    params = {
        "w1": 0.1 * jax.random.normal(ks[1], (3, 3, Cin, Cout), jnp.float32),
        "w2": 0.1 * jax.random.normal(ks[2], (3, 3, Cout, Cout), jnp.float32),
        "wsc": 0.1 * jax.random.normal(ks[3], (Cin, Cout), jnp.float32),
        "bn1": bn_params(ks[4], Cout),
        "bn2": bn_params(ks[5], Cout),
        "bnsc": bn_params(ks[6], Cout),
    }

    out = jax.block_until_ready(residual_block(x, params))
    ref = ref_residual_block(x, params)

    assert out.shape == (N, H, W, Cout), out.shape
    # bf16 MXU operands (per the perf review) loosen the match vs. the pure
    # f32 lax.conv reference; observed errors are O(1e-2) at these scales.
    err = jnp.max(jnp.abs(out - ref))
    assert jnp.allclose(out, ref, atol=1e-1, rtol=1e-1), f"max abs diff {err}"
    print("KERNEL_OK")
</pallas_src>

<mosaic_0001>
module attributes {stable_mosaic.version = 11 : i64} {
  func.func @kernel(%arg0: i32, %arg1: memref<64x64xbf16, #tpu.memory_space<vmem>>, %arg2: memref<64x256xbf16, #tpu.memory_space<vmem>>, %arg3: memref<2x64x128xbf16, #tpu.memory_space<vmem>>, %arg4: memref<3x128x128xbf16, #tpu.memory_space<vmem>>, %arg5: memref<2x128xf32, #tpu.memory_space<vmem>>, %arg6: memref<2x64x1xf32, #tpu.memory_space<vmem>>, %arg7: memref<64x128xf32, #tpu.memory_space<vmem>>) attributes {dimension_semantics = [#tpu.dimension_semantics<parallel>], iteration_bounds = array<i64: 2>, scalar_prefetch = 0 : i64, scratch_operands = 0 : i64, tpu.core_type = #tpu.core_type<tc>, window_params = [{transform_indices = @transform_0, window_bounds = array<i64: 64, 64>}, {pipeline_mode = #tpu.pipeline_mode<synchronous>, transform_indices = @transform_1, window_bounds = array<i64: 64, 256>}, {pipeline_mode = #tpu.pipeline_mode<synchronous>, transform_indices = @transform_2, window_bounds = array<i64: 2, 64, 128>}, {pipeline_mode = #tpu.pipeline_mode<synchronous>, transform_indices = @transform_3, window_bounds = array<i64: 3, 128, 128>}, {pipeline_mode = #tpu.pipeline_mode<synchronous>, transform_indices = @transform_4, window_bounds = array<i64: 2, 128>}, {pipeline_mode = #tpu.pipeline_mode<synchronous>, transform_indices = @transform_5, window_bounds = array<i64: 2, 64, 1>}, {transform_indices = @transform_6, window_bounds = array<i64: 64, 128>}]} {
    %c0 = arith.constant 0 : index
    %c0_0 = arith.constant 0 : index
    %c0_1 = arith.constant 0 : index
    %0 = vector.load %arg6[%c0, %c0_0, %c0_1] : memref<2x64x1xf32, #tpu.memory_space<vmem>>, vector<1x64x1xf32>
    %1 = vector.shape_cast %0 : vector<1x64x1xf32> to vector<64x1xf32>
    %c1 = arith.constant 1 : index
    %c0_2 = arith.constant 0 : index
    %c0_3 = arith.constant 0 : index
    %2 = vector.load %arg6[%c1, %c0_2, %c0_3] : memref<2x64x1xf32, #tpu.memory_space<vmem>>, vector<1x64x1xf32>
    %3 = vector.shape_cast %2 : vector<1x64x1xf32> to vector<64x1xf32>
    %c0_4 = arith.constant 0 : index
    %c0_5 = arith.constant 0 : index
    %4 = vector.load %arg1[%c0_4, %c0_5] : memref<64x64xbf16, #tpu.memory_space<vmem>>, vector<64x64xbf16>
    %c0_6 = arith.constant 0 : index
    %c0_7 = arith.constant 0 : index
    %5 = vector.load %arg2[%c0_6, %c0_7] : memref<64x256xbf16, #tpu.memory_space<vmem>>, vector<64x256xbf16>
    %cst = arith.constant dense<0.000000e+00> : vector<64x256xf32>
    %6 = tpu.matmul %4, %5, %cst {dimension_numbers = #tpu.dot_dimension_numbers<[1], [0], [0], [1], [0, 0, 1, 1], [], []>} : vector<64x64xbf16>, vector<64x256xbf16>, vector<64x256xf32> -> vector<64x256xf32>
    %c0_8 = arith.constant 0 : index
    %c0_9 = arith.constant 0 : index
    %c0_10 = arith.constant 0 : index
    %7 = vector.load %arg3[%c0_8, %c0_9, %c0_10] : memref<2x64x128xbf16, #tpu.memory_space<vmem>>, vector<1x64x128xbf16>
    %8 = vector.shape_cast %7 : vector<1x64x128xbf16> to vector<64x128xbf16>
    %cst_11 = arith.constant dense<0.000000e+00> : vector<64x128xf32>
    %9 = tpu.matmul %4, %8, %cst_11 {dimension_numbers = #tpu.dot_dimension_numbers<[1], [0], [0], [1], [0, 0, 1, 1], [], []>} : vector<64x64xbf16>, vector<64x128xbf16>, vector<64x128xf32> -> vector<64x128xf32>
    %c1_12 = arith.constant 1 : index
    %c0_13 = arith.constant 0 : index
    %c0_14 = arith.constant 0 : index
    %10 = vector.load %arg3[%c1_12, %c0_13, %c0_14] : memref<2x64x128xbf16, #tpu.memory_space<vmem>>, vector<1x64x128xbf16>
    %11 = vector.shape_cast %10 : vector<1x64x128xbf16> to vector<64x128xbf16>
    %cst_15 = arith.constant dense<0.000000e+00> : vector<64x128xf32>
    %12 = tpu.matmul %4, %11, %cst_15 {dimension_numbers = #tpu.dot_dimension_numbers<[1], [0], [0], [1], [0, 0, 1, 1], [], []>} : vector<64x64xbf16>, vector<64x128xbf16>, vector<64x128xf32> -> vector<64x128xf32>
    %13 = vector.extract_strided_slice %6 {offsets = [0, 0], sizes = [64, 128], strides = [1, 1]} : vector<64x256xf32> to vector<64x128xf32>
    %c1_i32 = arith.constant 1 : i32
    %14 = tpu.dynamic_rotate %9 by %c1_i32 dim 0 : vector<64x128xf32>, i32 -> vector<64x128xf32>
    %15 = vector.broadcast %1 : vector<64x1xf32> to vector<64x128xf32>
    %16 = arith.mulf %15, %14 : vector<64x128xf32>
    %17 = arith.addf %13, %16 : vector<64x128xf32>
    %c63_i32 = arith.constant 63 : i32
    %18 = tpu.dynamic_rotate %12 by %c63_i32 dim 0 : vector<64x128xf32>, i32 -> vector<64x128xf32>
    %19 = vector.broadcast %3 : vector<64x1xf32> to vector<64x128xf32>
    %20 = arith.mulf %19, %18 : vector<64x128xf32>
    %21 = arith.addf %17, %20 : vector<64x128xf32>
    %c0_16 = arith.constant 0 : index
    %c0_17 = arith.constant 0 : index
    %22 = vector.load %arg5[%c0_16, %c0_17] : memref<2x128xf32, #tpu.memory_space<vmem>>, vector<1x128xf32>
    %23 = vector.broadcast %22 : vector<1x128xf32> to vector<64x128xf32>
    %24 = arith.addf %21, %23 : vector<64x128xf32>
    %cst_18 = arith.constant 0.000000e+00 : f32
    %25 = vector.broadcast %cst_18 : f32 to vector<64x128xf32>
    %26 = arith.maximumf %24, %25 : vector<64x128xf32>
    %27 = arith.truncf %26 : vector<64x128xf32> to vector<64x128xbf16>
    %c1_i32_19 = arith.constant 1 : i32
    %28 = tpu.dynamic_rotate %26 by %c1_i32_19 dim 0 : vector<64x128xf32>, i32 -> vector<64x128xf32>
    %29 = vector.broadcast %1 : vector<64x1xf32> to vector<64x128xf32>
    %30 = arith.mulf %29, %28 : vector<64x128xf32>
    %31 = arith.truncf %30 : vector<64x128xf32> to vector<64x128xbf16>
    %c63_i32_20 = arith.constant 63 : i32
    %32 = tpu.dynamic_rotate %26 by %c63_i32_20 dim 0 : vector<64x128xf32>, i32 -> vector<64x128xf32>
    %33 = vector.broadcast %3 : vector<64x1xf32> to vector<64x128xf32>
    %34 = arith.mulf %33, %32 : vector<64x128xf32>
    %35 = arith.truncf %34 : vector<64x128xf32> to vector<64x128xbf16>
    %36 = vector.extract_strided_slice %6 {offsets = [0, 128], sizes = [64, 128], strides = [1, 1]} : vector<64x256xf32> to vector<64x128xf32>
    %c0_21 = arith.constant 0 : index
    %c0_22 = arith.constant 0 : index
    %c0_23 = arith.constant 0 : index
    %37 = vector.load %arg4[%c0_21, %c0_22, %c0_23] : memref<3x128x128xbf16, #tpu.memory_space<vmem>>, vector<1x128x128xbf16>
    %38 = vector.shape_cast %37 : vector<1x128x128xbf16> to vector<128x128xbf16>
    %cst_24 = arith.constant dense<0.000000e+00> : vector<64x128xf32>
    %39 = tpu.matmul %31, %38, %cst_24 {dimension_numbers = #tpu.dot_dimension_numbers<[1], [0], [0], [1], [0, 0, 1, 1], [], []>} : vector<64x128xbf16>, vector<128x128xbf16>, vector<64x128xf32> -> vector<64x128xf32>
    %40 = arith.addf %36, %39 : vector<64x128xf32>
    %c1_25 = arith.constant 1 : index
    %c0_26 = arith.constant 0 : index
    %c0_27 = arith.constant 0 : index
    %41 = vector.load %arg4[%c1_25, %c0_26, %c0_27] : memref<3x128x128xbf16, #tpu.memory_space<vmem>>, vector<1x128x128xbf16>
    %42 = vector.shape_cast %41 : vector<1x128x128xbf16> to vector<128x128xbf16>
    %cst_28 = arith.constant dense<0.000000e+00> : vector<64x128xf32>
    %43 = tpu.matmul %27, %42, %cst_28 {dimension_numbers = #tpu.dot_dimension_numbers<[1], [0], [0], [1], [0, 0, 1, 1], [], []>} : vector<64x128xbf16>, vector<128x128xbf16>, vector<64x128xf32> -> vector<64x128xf32>
    %44 = arith.addf %40, %43 : vector<64x128xf32>
    %c2 = arith.constant 2 : index
    %c0_29 = arith.constant 0 : index
    %c0_30 = arith.constant 0 : index
    %45 = vector.load %arg4[%c2, %c0_29, %c0_30] : memref<3x128x128xbf16, #tpu.memory_space<vmem>>, vector<1x128x128xbf16>
    %46 = vector.shape_cast %45 : vector<1x128x128xbf16> to vector<128x128xbf16>
    %cst_31 = arith.constant dense<0.000000e+00> : vector<64x128xf32>
    %47 = tpu.matmul %35, %46, %cst_31 {dimension_numbers = #tpu.dot_dimension_numbers<[1], [0], [0], [1], [0, 0, 1, 1], [], []>} : vector<64x128xbf16>, vector<128x128xbf16>, vector<64x128xf32> -> vector<64x128xf32>
    %48 = arith.addf %44, %47 : vector<64x128xf32>
    %c1_32 = arith.constant 1 : index
    %c0_33 = arith.constant 0 : index
    %49 = vector.load %arg5[%c1_32, %c0_33] : memref<2x128xf32, #tpu.memory_space<vmem>>, vector<1x128xf32>
    %50 = vector.broadcast %49 : vector<1x128xf32> to vector<64x128xf32>
    %51 = arith.addf %48, %50 : vector<64x128xf32>
    %cst_34 = arith.constant 0.000000e+00 : f32
    %52 = vector.broadcast %cst_34 : f32 to vector<64x128xf32>
    %53 = arith.maximumf %51, %52 : vector<64x128xf32>
    %c0_35 = arith.constant 0 : index
    %c0_36 = arith.constant 0 : index
    %54 = vector.load %arg7[%c0_35, %c0_36] : memref<64x128xf32, #tpu.memory_space<vmem>>, vector<64x128xf32>
    tpu.vector_store %arg7[%c0_35, %c0_36], %53 {strides = array<i32>} : memref<64x128xf32, #tpu.memory_space<vmem>>, vector<64x128xf32>,
    return
  }
  func.func @transform_0(%arg0: i32) -> (i32, i32) {
    %c0_i32 = arith.constant 0 : i32
    %c0_i32_0 = arith.constant 0 : i32
    return %arg0, %c0_i32 : i32, i32
  }
  func.func @transform_1(%arg0: i32) -> (i32, i32) {
    %c0_i32 = arith.constant 0 : i32
    %c0_i32_0 = arith.constant 0 : i32
    %c0_i32_1 = arith.constant 0 : i32
    return %c0_i32, %c0_i32_0 : i32, i32
  }
  func.func @transform_2(%arg0: i32) -> (i32, i32, i32) {
    %c0_i32 = arith.constant 0 : i32
    %c0_i32_0 = arith.constant 0 : i32
    %c0_i32_1 = arith.constant 0 : i32
    %c0_i32_2 = arith.constant 0 : i32
    return %c0_i32, %c0_i32_0, %c0_i32_1 : i32, i32, i32
  }
  func.func @transform_3(%arg0: i32) -> (i32, i32, i32) {
    %c0_i32 = arith.constant 0 : i32
    %c0_i32_0 = arith.constant 0 : i32
    %c0_i32_1 = arith.constant 0 : i32
    %c0_i32_2 = arith.constant 0 : i32
    return %c0_i32, %c0_i32_0, %c0_i32_1 : i32, i32, i32
  }
  func.func @transform_4(%arg0: i32) -> (i32, i32) {
    %c0_i32 = arith.constant 0 : i32
    %c0_i32_0 = arith.constant 0 : i32
    %c0_i32_1 = arith.constant 0 : i32
    return %c0_i32, %c0_i32_0 : i32, i32
  }
  func.func @transform_5(%arg0: i32) -> (i32, i32, i32) {
    %c0_i32 = arith.constant 0 : i32
    %c0_i32_0 = arith.constant 0 : i32
    %c0_i32_1 = arith.constant 0 : i32
    %c0_i32_2 = arith.constant 0 : i32
    return %c0_i32, %c0_i32_0, %c0_i32_1 : i32, i32, i32
  }
  func.func @transform_6(%arg0: i32) -> (i32, i32) {
    %c0_i32 = arith.constant 0 : i32
    %c0_i32_0 = arith.constant 0 : i32
    return %arg0, %c0_i32 : i32, i32
  }
}

</mosaic_0001>

<bundles_post_ra>
// kernel: tpu_custom_call.1
= control target key start
LH: loop header
LB: loop body
LE: loop exit
PB: predicated region body
PF: predicated region fallthrough
CT: control target
= control target key end

     0   :  { %11 = vsyncpa [#allocation3], 0  ;;  %s2324_s0 = inlined_call_operand.vmem [shape: bf16[128,64], index: 0, kind: input, shape index: {}]   ;;  %s2325_s1 = inlined_call_operand.hbm [shape: bf16[64,256], index: 1, kind: input, shape index: {}]   ;;  %s2326_s2 = inlined_call_operand.hbm [shape: bf16[2,64,128], index: 2, kind: input, shape index: {}]   ;;  %s2327_s3 = inlined_call_operand.vmem [shape: bf16[3,128,128], index: 3, kind: input, shape index: {}]   ;;  %s2328_s4 = inlined_call_operand.vmem [shape: f32[2,128], index: 4, kind: input, shape index: {}]   ;;  %s2329_s5 = inlined_call_operand.vmem [shape: f32[2,64,1], index: 5, kind: input, shape index: {}]   ;;  %s2330_s6 = inlined_call_operand.hbm [shape: f32[128,128], index: 6, kind: output, shape index: {}]  }
   0x1   :  { %12 = vsyncpa [#allocation6], 0 }
   0x2   :  { %13 = vsyncpa [#allocation4], 0 }
   0x3   :  { %15 = vsyncpa [#allocation4 + $0x1], 0  ;;  %s1789_s21 = smov 0   ;;  %s1791_s22 = smov 0  }
   0x4   :  { %s1793_s23 = smov 0   ;;  %s1795_s24 = smov 0  }
   0x5 LB: > { %s1810_s25 = sadd.s32 4294967295, %s1743_s24   ;;  %s1232_s26 = sadd.s32 4294967294, %s1743_s24   ;;  %s1743_s24 = sphi %s1795_s24, %s2337_s24   ;;  %s1739_s23 = sphi %s1793_s23, %s2336_s23   ;;  %s1735_s22 = sphi %s1791_s22, %s2335_s22   ;;  %s1731_s21 = sphi %s1789_s21, %s2334_s21  }
   0x6   : > { %s1814_s27 = sadd.s32 1, %s1743_s24   ;;  %s159_s28 = sadd.s32 1, %s1739_s23 }
   0x7   : > { %s156_s29 = ssub.s32 %s1743_s24, %s1814_s27  ;;  %p169_p0 = scmp.ne.s32.totalorder %s1739_s23, %s1735_s22 }
   0x8   : > { %p157_p1 = scmp.eq.s32.totalorder %s156_s29, 0  ;;  %p170_p2 = scmp.eq.s32.totalorder %s1810_s25, 1 }
   0x9   : > { %p175_p3 = scmp.ne.s32.totalorder %s1735_s22, %s1731_s21  ;;  %p176_p4 = scmp.eq.s32.totalorder %s1232_s26, 1 }
   0xa   : > { %s1825_s30 = scalar_select %p157_p1, %s1739_s23, %s159_s28  }
   0xb   : > { %p1827_p5 = por %p170_p2, %p169_p0  ;;  %p1831_p6 = por %p176_p4, %p175_p3 }
   0xc   : > { %p1233_p7 = scmp.ge.s32.totalorder %s1743_s24, 1  ;;  %p183_p8 = scmp.lt.s32.totalorder %s1743_s24, 3 }
   0xd   : > { %p1562_p9 = scmp.eq.s32.totalorder %s1810_s25, 0  ;;  %s194_s12 = sshll.u32 %s2325_s1, 4  ;;  %s195_s12 = int_to_ptr.hbm [resolvable:$true] %s194_s12 }
   0xe   : > { %p1838_p10 = pnand %p1233_p7, %p183_p8  ;;  %s1745_s13 = smov [#allocation2]  }
   0xf   : > { %s196_s14 = sshll.u32 %s1745_s13, 4  ;;  %s208_s17 = sshll.u32 %s2326_s2, 4  ;;  %s197_s14 = int_to_ptr.vmem [resolvable:$true] %s196_s14  ;;  %s209_s17 = int_to_ptr.hbm [resolvable:$true] %s208_s17 }
  0x10   : > { %p1551_p11 = pneg %p1838_p10  ;;  %s1746_s18 = smov 128  }
  0x11   : > { %s1747_s19 = smov 8   ;;  %s1748_s20 = smov [#allocation5]  }
  0x12   : > { %p1552_p12 = pnand %p1562_p9, %p1551_p11  ;;  %s210_s26 = sshll.u32 %s1748_s20, 4  ;;  %s211_s26 = int_to_ptr.vmem [resolvable:$true] %s210_s26 }
  0x13   : > { %s1749_s28 = smov 64   ;;  %s1750_s29 = smov 4  }
  0x14   : > { %1554 = dma.hbm_to_vmem [thread:$0]  (!%p1552_p12), %s195_s12, 1024, %s197_s14, [#allocation3], %s1746_s18, %s1746_s18, %s1747_s19  }
  0x15   : > { %1557 = dma.hbm_to_vmem [thread:$0]  (!%p1552_p12), %s209_s17, 1024, %s211_s26, [#allocation6], %s1749_s28, %s1749_s28, %s1750_s29  }
  0x16   : > { %244 = sbr.rel (%p1838_p10) target bundleno = 513 (0x201), region = 44 }
  0x1b   : > { %1718 = dma.done.wait (%p1562_p9), [#allocation3], 1024  }
  0x1c   : > { %1720 = vsyncadd (%p1562_p9), [#allocation3], 4294966272 }
  0x1d   : > { %1722 = dma.done.wait (%p1562_p9), [#allocation6], 1024  }
  0x1e   : > { %1724 = vsyncadd (%p1562_p9), [#allocation6], 4294966272  ;;  %s1241_s10 = sshll.u32 %s1810_s25, 3  ;;  %v1293_v0 = vld [vmem:[#allocation2 + $0x30] sm:$0xf]  ;;  %v1495_v2 = vld [vmem:[#allocation5 + $0x18] sm:$0xff] }
  0x1f   : > { %p281_p13 = scmp.lt.s32.totalorder %s1241_s10, 15  ;;  %v1491_v1 = vld [vmem:[#allocation2 + $0x34] sm:$0xf0]  ;;  %v1285_v4 = vld [vmem:[#allocation2 + $0x20] sm:$0xf]  ;;  %488 = vmatpush.bf16.msra.mxu2 %v1495_v2  ;;  %v1494_v6 = vld [vmem:[#allocation5 + $0x10] sm:$0xff] }
  0x20   : > { %v1294_v3 = vor.u32 %v1491_v1, %v1293_v0  ;;  %v1489_v5 = vld [vmem:[#allocation2 + $0x24] sm:$0xf0]  ;;  %v1751_v8 = vmov 0   ;;  %v1277_v9 = vld [vmem:[#allocation2 + $0x10] sm:$0xf]  ;;  %v295_v11 = vld [vmem:[%s2329_s5 + $0x38] sm:$0xff] }
  0x21   : > { %v1286_v7 = vor.u32 %v1489_v5, %v1285_v4  ;;  %s2339_s10 = smov (!%p281_p13, %s1241_s10), 15  ;;  %1609 = vset.pattern.permute.xlu1 %v1751_v8  ;;  %v1487_v10 = vld [vmem:[#allocation2 + $0x14] sm:$0xf0]  ;;  %1608 = vset.pattern.permute.xlu0 %v1751_v8  ;;  %v288_v12 = vld [vmem:[%s2329_s5] sm:$0xff]  ;;  %v1493_v13 = vld [vmem:[#allocation5 + $0x8] sm:$0xff]  ;;  %vm381_vm0 = vcmask 523264  }
  0x22   : > { %1525 = vmatpush.bf16.msra.mxu3 %v1294_v3  ;;  %398 = vmatpush.bf16.msra.mxu0 %v1294_v3  ;;  %v1278_v14 = vor.u32 %v1487_v10, %v1277_v9  ;;  %s1242_s14 = sshll.u32 %s2339_s10, 2  ;;  %v1269_v15 = vld [vmem:[#allocation2] sm:$0xf]  ;;  %v1485_v16 = vld [vmem:[#allocation2 + $0x4] sm:$0xf0]  ;;  %v1245_v23 = vld [vmem:[%s2329_s5 + $0x50] sm:$0xff] }
  0x23   : > { %1610 = vset.pattern.permute.xlu2 %v1751_v8  ;;  %489 = vmatpush.bf16.msra.mxu2 %v1494_v6  ;;  %v1492_v17 = vld [vmem:[#allocation5] sm:$0xff]  ;;  %s284_s17 = scalar_lea.vmem %s2324_s0, %s1242_s14  ;;  %v1270_v18 = vor.u32 %v1485_v16, %v1269_v15  ;;  %v289_v22 = vld [vmem:[%s2329_s5 + $0x8] sm:$0xff]  ;;  %v290_v24 = vld [vmem:[%s2329_s5 + $0x10] sm:$0xff]  ;;  %s277_s26 = sand.u32 1, %s1735_s22  }
  0x24   : > { %631 = vperm.xlu1 %1609, %v295_v11   ;;  %596 = vperm.xlu0 %1608, %v288_v12   ;;  %v1872_v19 = vld [vmem:[%s284_s17] sm:$0xff]  ;;  %v1874_v20 = vld [vmem:[%s284_s17 + $0x10] sm:$0xff]  ;;  %v1499_v25 = vld [vmem:[#allocation5 + $0x38] sm:$0xff]  ;;  %s1240_s10 = sshll.u32 %s277_s26, 6  ;;  %s1524_s11 = sshll.u32 %s1810_s25, 6 }
  0x25   : > { %v1243_v21 = vld [vmem:[%s2329_s5 + $0x40] sm:$0xff]  ;;  %v1481_v26 = vld [vmem:[%s284_s17 + $0x8] sm:$0xff]  ;;  %v1498_v27 = vld [vmem:[#allocation5 + $0x30] sm:$0xff]  ;;  %s2268_s9 = scalar_lea.vmem [#allocation7], %s1240_s10  ;;  %s1144_s14 = scalar_lea.hbm %s2330_s6, %s1524_s11 }
  0x26   : > { %1526 = vmatpush.bf16.msra.mxu3 %v1286_v7  ;;  %399 = vmatpush.bf16.msra.mxu0 %v1286_v7  ;;  %v1894_v28 = vld [vmem:[%s284_s17 + $0x18] sm:$0xff]  ;;  %v1497_v29 = vld [vmem:[#allocation5 + $0x28] sm:$0xff]  ;;  %v292_v31 = vld [vmem:[%s2329_s5 + $0x20] sm:$0xff]  ;;  %s1145_s15 = sshll.u32 %s2268_s9, 4  ;;  %s1147_s16 = sshll.u32 %s1144_s14, 4  ;;  %s1146_s15 = int_to_ptr.vmem [resolvable:$true] %s1145_s15  ;;  %s1148_s16 = int_to_ptr.hbm [resolvable:$true] %s1147_s16 }
  0x27   : > { %490 = vmatpush.bf16.msra.mxu2 %v1493_v13  ;;  %v1244_v30 = vld [vmem:[%s2329_s5 + $0x48] sm:$0xff]  ;;  %v1246_v32 = vld [vmem:[%s2329_s5 + $0x58] sm:$0xff]  ;;  %v1496_v33 = vld [vmem:[#allocation5 + $0x20] sm:$0xff]  ;;  %s1133_s25 = scalar_lea.sflag [#allocation4], %s277_s26  ;;  %s1687_s17 = sshra.s32 %s1148_s16, 4  ;;  %s1688_s17 = int_to_ptr.hbm [resolvable:$true] %s1687_s17 }
  0x28   : > { %674 = vperm.xlu2 %1610, %v1244_v30   ;;  %v1250_v34 = vld [vmem:[%s2329_s5 + $0x78] sm:$0xff]  ;;  %v293_v35 = vld [vmem:[%s2329_s5 + $0x28] sm:$0xff]  ;;  %v1247_v37 = vld [vmem:[%s2329_s5 + $0x60] sm:$0xff]  ;;  %s1689_s18 = scalar_lea.hbm %s1688_s17, 64  ;;  %s1693_s28 = scalar_lea.hbm %s2330_s6, 128 }
  0x29   : > { %v291_v36 = vld [vmem:[%s2329_s5 + $0x18] sm:$0xff]  ;;  %v294_v38 = vld [vmem:[%s2329_s5 + $0x30] sm:$0xff]  ;;  %v1248_v40 = vld [vmem:[%s2329_s5 + $0x68] sm:$0xff]  ;;  %p1690_p0 = scmp.ne.s32.totalorder %s1688_s17, %s1689_s18  ;;  %p1694_p3 = scmp.lt.s32.totalorder %s1688_s17, %s2330_s6 }
  0x2a   : > { %1527 = vmatpush.bf16.msra.mxu3 %v1278_v14  ;;  %400 = vmatpush.bf16.msra.mxu0 %v1278_v14  ;;  %v1249_v39 = vld [vmem:[%s2329_s5 + $0x70] sm:$0xff]  ;;  %v1295_v42 = vld [vmem:[#allocation2 + $0x38] sm:$0xf0]  ;;  %v1488_v44 = vld [vmem:[#allocation2 + $0x24] sm:$0xf]  ;;  %p1695_p4 = scmp.lt.s32.totalorder %s1693_s28, %s1689_s18 }
  0x2b   : > { %491 = vmatpush.bf16.msra.mxu2 %v1492_v17  ;;  %v1490_v41 = vld [vmem:[#allocation2 + $0x34] sm:$0xf]  ;;  %v1287_v45 = vld [vmem:[#allocation2 + $0x28] sm:$0xf0]  ;;  %v1279_v48 = vld [vmem:[#allocation2 + $0x18] sm:$0xf0]  ;;  %p1691_p1 = pnand %p1690_p0, %p1827_p5 }
  0x2c   : > { %669 = vperm.xlu1 %1609, %v1243_v21   ;;  %601 = vperm.xlu0 %1608, %v289_v22   ;;  %v1298_v43 = vor.u32 %v1490_v41, %v1295_v42  ;;  %v1486_v46 = vld [vmem:[#allocation2 + $0x14] sm:$0xf]  ;;  %v1290_v47 = vor.u32 %v1488_v44, %v1287_v45  ;;  %v1484_v50 = vld [vmem:[#allocation2 + $0x4] sm:$0xf]  ;;  %v1271_v51 = vld [vmem:[#allocation2 + $0x8] sm:$0xf0]  ;;  %p1696_p7 = por %p1695_p4, %p1694_p3 }
  0x2d   : > { %v1282_v49 = vor.u32 %v1486_v46, %v1279_v48  ;;  %v1274_v52 = vor.u32 %v1484_v50, %v1271_v51  ;;  %v1523_v0 = vld [vmem:[%s2327_s3 + $0xb8] sm:$0xff]  ;;  %v1522_v3 = vld [vmem:[%s2327_s3 + $0xb0] sm:$0xff]  ;;  %v1521_v8 = vld [vmem:[%s2327_s3 + $0xa8] sm:$0xff]  ;;  %p1692_p2 = pneg %p1691_p1 }
  0x2e   : > { %1528 = vmatpush.bf16.msra.mxu3 %v1270_v18  ;;  %401 = vmatpush.bf16.msra.mxu0 %v1270_v18  ;;  %v1968_v1 = vld [vmem:[%s2327_s3 + $0x78] sm:$0xff]  ;;  %v1983_v7 = vld [vmem:[%s2327_s3 + $0x70] sm:$0xff]  ;;  %v1994_v10 = vld [vmem:[%s2327_s3 + $0x68] sm:$0xff] }
  0x2f   : > { %1323 = vmatmul.msk.bf16.vlgmr.msra.gmra.mxu2 %vm381_vm0, %v1872_v19  ;;  %427 = vmatpush.bf16.msra.mxu1 %v1298_v43  ;;  %v1520_v11 = vld [vmem:[%s2327_s3 + $0xa0] sm:$0xff]  ;;  %v1507_v43 = vld [vmem:[%s2327_s3 + $0x38] sm:$0xff]  ;;  %p1697_p8 = pnand %p1696_p7, %p1692_p2 }
  0x30   : > { %704 = vperm.xlu2 %1610, %v1250_v34   ;;  %1069 = vmatpush.bf16.msrb.mxu2 %v1523_v0  ;;  %v2009_v18 = vld [vmem:[%s2327_s3 + $0x60] sm:$0xff] }
  0x31   : > { %1301 = vmatmul.msk.bf16.vlgmr.msra.gmra.mxu3 %vm381_vm0, %v1874_v20  ;;  %1299 = vmatmul.msk.bf16.vlgmr.msra.gmra.mxu0 %vm381_vm0, %v1872_v19  ;;  %v2071_v42 = vld [vmem:[%s2327_s3 + $0x40] sm:$0xff] }
  0x32   : > { %1529 = vmatpush.bf16.msrb.mxu3 %v1495_v2  ;;  %865 = vmatpush.bf16.msrb.mxu0 %v1507_v43 }
  0x33   : > { %428 = vmatpush.bf16.msra.mxu1 %v1290_v47 }
  0x34   : > { %679 = vperm.xlu1 %1609, %v1245_v23   ;;  %606 = vperm.xlu0 %1608, %v290_v24  }
  0x35   : > { %1070 = vmatpush.bf16.msrb.mxu2 %v1522_v3  ;;  %v2097_v3 = vld [vmem:[%s2328_s4] ss:$0 sm:$0xff] }
  0x36   : > { %1530 = vmatpush.bf16.msrb.mxu3 %v1494_v6  ;;  %v583_v6 = vlaneseq }
  0x37   : > { %429 = vmatpush.bf16.msra.mxu1 %v1282_v49 }
  0x38   : > { %611 = vperm.xlu2 %1610, %v291_v36   ;;  %v1989_v9 = vshrl.u32 %v583_v6, 7  ;;  %v1516_v36 = vld [vmem:[%s2327_s3 + $0x80] sm:$0xff]  ;;  %v1505_v6 = vld [vmem:[%s2327_s3 + $0x28] sm:$0xff] }
  0x39   : > { %1071 = vmatpush.bf16.msrb.mxu2 %v1521_v8 }
  0x3a   : > { %1531 = vmatpush.bf16.msrb.mxu3 %v1493_v13  ;;  %vm585_vm1 = vcmp.lt.s32.totalorder %v1989_v9, 1  ;;  %vm658_vm2 = vcmp.lt.s32.totalorder %v1989_v9, 7 }
  0x3b   : > { %430 = vmatpush.bf16.msra.mxu1 %v1274_v52  ;;  %v1506_v52 = vld [vmem:[%s2327_s3 + $0x30] sm:$0xff] }
  0x3c   : > { %616 = vperm.xlu1 %1609, %v292_v31   ;;  %684 = vperm.xlu0 %1608, %v1246_v32   ;;  %v2047_v32 = vld [vmem:[%s2327_s3 + $0x50] sm:$0xff] }
  0x3d   : > { %1072 = vmatpush.bf16.msrb.mxu2 %v1520_v11  ;;  %866 = vmatpush.bf16.msrb.mxu0 %v1506_v52 }
  0x3e   : > { %1532 = vmatpush.bf16.msrb.mxu3 %v1492_v17  ;;  %1303 = vmatmul.msk.bf16.vlgmr.msra.gmra.mxu1 %vm381_vm0, %v1872_v19 }
  0x3f   : > { %1324 = vmatmul.msk.bf16.gmra.mxu2 %vm381_vm0, %v1481_v26  ;;  %1533 = vmatpush.bf16.msrb.mxu1 %v1968_v1 }
  0x40   : > { %689 = vperm.xlu2 %1610, %v1247_v37  }
  0x41   : > { %1302 = vmatmul.msk.bf16.gmra.mxu3 %vm381_vm0, %v1894_v28  ;;  %1300 = vmatmul.msk.bf16.gmra.mxu0 %vm381_vm0, %v1481_v26 }
  0x42   : > { %550 = vmatpush.bf16.msra.mxu3 %v1499_v25  ;;  %867 = vmatpush.bf16.msrb.mxu0 %v1505_v6 }
  0x43   : > { %1534 = vmatpush.bf16.msrb.mxu1 %v1983_v7 }
  0x44   : > { %621 = vperm.xlu0 %1608, %v293_v35   ;;  %694 = vperm.xlu1 %1609, %v1248_v40   ;;  %v2057_v35 = vld [vmem:[%s2327_s3 + $0x48] sm:$0xff] }
  0x46   : > { %551 = vmatpush.bf16.msra.mxu3 %v1498_v27 }
  0x47   : > { %1535 = vmatpush.bf16.msrb.mxu1 %v1994_v10 }
  0x48   : > { %626 = vperm.xlu2 %1610, %v294_v38  }
  0x4a   : > { %552 = vmatpush.bf16.msra.mxu3 %v1497_v29  ;;  %v1518_v29 = vld [vmem:[%s2327_s3 + $0x90] sm:$0xff] }
  0x4b   : > { %1536 = vmatpush.bf16.msrb.mxu1 %v2009_v18 }
  0x4c   : > { %699 = vperm.xlu0 %1608, %v1249_v39  }
  0x4e   : > { %553 = vmatpush.bf16.msra.mxu3 %v1496_v33  ;;  %1304 = vmatmul.msk.bf16.gmra.mxu1 %vm381_vm0, %v1481_v26 }
  0x4f   : > { %1325 = vmatmul.msk.bf16.gmra.mxu2 %vm381_vm0, %v1874_v20 }
  0x51   : > { %1326 = vmatmul.msk.bf16.vlgmr.msrb.gmra.mxu3 %vm381_vm0, %v1894_v28 }
  0x5e   : > { %1305 = vmatmul.msk.bf16.gmra.mxu1 %vm381_vm0, %v1874_v20 }
  0x61   : > { %1343 = vmatmul.msk.bf16.vlgmr.msra.gmra.mxu3 %vm381_vm0, %v1872_v19 }
  0x6e   : > { %1306 = vmatmul.msk.bf16.gmra.mxu1 %vm381_vm0, %v1894_v28 }
  0x71   : > { %1344 = vmatmul.msk.bf16.gmra.mxu3 %vm381_vm0, %v1481_v26  ;;  %v2030_v26 = vld [vmem:[%s2327_s3 + $0x58] sm:$0xff] }
  0x72   : > { %1537 = vmatpush.bf16.msrb.mxu1 %v2030_v26 }
  0x76   : > { %1538 = vmatpush.bf16.msrb.mxu1 %v2047_v32 }
  0x7a   : > { %1539 = vmatpush.bf16.msrb.mxu1 %v2057_v35 }
  0x7e   : > { %1540 = vmatpush.bf16.msrb.mxu1 %v2071_v42 }
  0x81   : > { %1345 = vmatmul.msk.bf16.gmra.mxu3 %vm381_vm0, %v1874_v20  ;;  %v1519_v20 = vld [vmem:[%s2327_s3 + $0x98] sm:$0xff] }
  0x82   : > { %v1947_v55 = vpop.permute.xlu2 %674  ;;  %1073 = vmatpush.bf16.msrb.mxu2 %v1519_v20 }
  0x86   : > { %1074 = vmatpush.bf16.msrb.mxu2 %v1518_v29 }
  0x8a   : > { %v1953_v58 = vpop.permute.xlu2 %704 }
  0x91   : > { %1346 = vmatmul.msk.bf16.gmra.mxu3 %vm381_vm0, %v1894_v28  ;;  %v1517_v28 = vld [vmem:[%s2327_s3 + $0x88] sm:$0xff] }
  0x92   : > { %v1958_v61 = vpop.permute.xlu2 %611  ;;  %1075 = vmatpush.bf16.msrb.mxu2 %v1517_v28 }
  0x96   : > { %v2018_v21 = vpop.permute.xlu1 %631  ;;  %v2042_v31 = vpop.permute.xlu0 %596  ;;  %1076 = vmatpush.bf16.msrb.mxu2 %v1516_v36 }
  0x9a   : > { %v1970_v2 = vpop.permute.xlu2 %689 }
  0x9e   : > { %v2078_v45 = vpop.permute.xlu0 %601  ;;  %v2086_v49 = vpop.permute.xlu1 %669 }
  0xa2   : > { %v2003_v16 = vpop.permute.xlu2 %626 }
  0xae   : > { %v403_v33 = vpop.f32.mrf.mxu0 }
  0xb2   : > { %v1943_v53 = vpop.f32.mrf.mxu2 }
  0xb3   : > { %v575_v34 = vrot.slane %v1943_v53, 7 }
  0xb4   : > { %v1945_v54 = vpop.f32.mrf.mxu3 }
  0xb6   : > { %v405_v47 = vpop.f32.mrf.mxu0 }
  0xba   : > { %v1949_v56 = vpop.f32.mrf.mxu2 }
  0xbb   : > { %v576_v37 = vrot.slane %v1949_v56, 7 }
  0xbc   : > { %v1951_v57 = vpop.f32.mrf.mxu3 }
  0xbd   : > { %v592_v44 = vsel %vm585_vm1, %v575_v34, %v576_v37 }
  0xbe   : > { %v635_v50 = vmul.f32 %v2078_v45, %v592_v44 }
  0xc2   : > { %v1956_v59 = vpop.f32.mrf.mxu2 }
  0xc3   : > { %v577_v53 = vrot.slane %v1956_v59, 7 }
  0xc4   : > { %v418_v60 = vpop.f32.mrf.mxu3 }
  0xc5   : > { %v591_v8 = vsel %vm585_vm1, %v576_v37, %v577_v53  ;;  %v1503_v37 = vld [vmem:[%s2327_s3 + $0x18] sm:$0xff] }
  0xca   : > { %v1960_v62 = vpop.f32.mrf.mxu2 }
  0xcb   : > { %v578_v29 = vrot.slane %v1960_v62, 7 }
  0xcc   : > { %v420_v63 = vpop.f32.mrf.mxu3 }
  0xd2   : > { %v1977_v4 = vpop.f32.mrf.mxu2 }
  0xd4   : > { %v508_v5 = vpop.f32.mrf.mxu3 }
  0xd5   : > { %v581_v13 = vrot.slane %v508_v5, 7  ;;  %v643_v5 = vadd.f32 %v635_v50, %v405_v47  ;;  %v1502_v47 = vld [vmem:[%s2327_s3 + $0x10] sm:$0xff] }
  0xda   : > { %v1999_v12 = vpop.f32.mrf.mxu2 }
  0xdb   : > { %v580_v14 = vrot.slane %v1999_v12, 7 }
  0xdc   : > { %v510_v15 = vpop.f32.mrf.mxu3 }
  0xdd   : > { %v582_v17 = vrot.slane %v510_v15, 7  ;;  %v587_v19 = vsel %vm585_vm1, %v580_v14, %v581_v13  ;;  %v408_v15 = vpop.f32.mrf.mxu0 }
  0xde   : > { %v640_v23 = vmul.f32 %v2003_v16, %v587_v19 }
  0xdf   : > { %v586_v22 = vsel %vm585_vm1, %v581_v13, %v582_v17  ;;  %v593_v39 = vsel %vm585_vm1, %v582_v17, %v575_v34  ;;  %v2107_v13 = vpop.permute.xlu0 %606 }
  0xe0   : > { %v641_v24 = vmul.f32 %v2018_v21, %v586_v22  ;;  %v2025_v25 = vadd.f32 %v640_v23, %v418_v60  ;;  %v634_v48 = vmul.f32 %v2042_v31, %v593_v39  ;;  %v636_v17 = vmul.f32 %v2107_v13, %v591_v8  ;;  %v1504_v22 = vld [vmem:[%s2327_s3 + $0x20] sm:$0xff] }
  0xe1   : > { %868 = vmatpush.bf16.msrb.mxu0 %v1504_v22  ;;  %v590_v39 = vsel %vm585_vm1, %v577_v53, %v578_v29  ;;  %v579_v53 = vrot.slane %v1977_v4, 7 }
  0xe2   : > { %v2032_v27 = vadd.f32 %v641_v24, %v420_v63  ;;  %v642_v56 = vadd.f32 %v634_v48, %v403_v33  ;;  %v644_v36 = vadd.f32 %v636_v17, %v408_v15  ;;  %v637_v44 = vmul.f32 %v1958_v61, %v590_v39  ;;  %v1500_v15 = vld [vmem:[%s2327_s3] sm:$0xff] }
  0xe3   : > { %v589_v17 = vsel %vm585_vm1, %v578_v29, %v579_v53 }
  0xe4   : > { %v2040_v30 = vpop.f32.mrf.mxu3 }
  0xe5   : > { %v650_v40 = vrot.slane %v2040_v30, 1  ;;  %869 = vmatpush.bf16.msrb.mxu0 %v1503_v37  ;;  %v410_v48 = vpop.f32.mrf.mxu0 }
  0xe7   : > { %v685_v6 = vpop.permute.xlu0 %684 }
  0xe9   : > { %870 = vmatpush.bf16.msrb.mxu0 %v1502_v47 }
  0xec   : > { %v557_v38 = vpop.f32.mrf.mxu3 }
  0xed   : > { %v651_v41 = vrot.slane %v557_v38, 1  ;;  %v2123_v38 = vpop.permute.xlu1 %679 }
  0xef   : > { %v665_v46 = vsel %vm658_vm2, %v650_v40, %v651_v41  ;;  %v622_v47 = vpop.permute.xlu0 %621 }
  0xf0   : > { %v707_v51 = vmul.f32 %v2086_v49, %v665_v46 }
  0xf2   : > { %v715_v0 = vadd.f32 %v707_v51, %v642_v56 }
  0xf4   : > { %v560_v60 = vpop.f32.mrf.mxu3  ;;  %v725_v19 = vadd.f32 %v2097_v3, %v715_v0 }
  0xf5   : > { %v652_v63 = vrot.slane %v560_v60, 1 }
  0xf6   : > { %v2116_v33 = vmax.f32 %v725_v19, 0.0  ;;  %v2157_v19 = vpop.permute.xlu1 %616 }
  0xf7   : > { %v664_v59 = vsel %vm658_vm2, %v651_v41, %v652_v63 }
  0xf8   : > { %v708_v11 = vmul.f32 %v1947_v55, %v664_v59  ;;  %v773_v0 = vrot.slane %v2116_v33, 1 }
  0xfa   : > { %v716_v20 = vadd.f32 %v708_v11, %v643_v5  ;;  %v1501_v5 = vld [vmem:[%s2327_s3 + $0x8] sm:$0xff] }
  0xfb   : > { %871 = vmatpush.bf16.msrb.mxu0 %v1501_v5 }
  0xfc   : > { %v726_v23 = vadd.f32 %v2097_v3, %v716_v20  ;;  %v562_v24 = vpop.f32.mrf.mxu3 }
  0xfd   : > { %v653_v28 = vrot.slane %v562_v24, 1 }
  0xfe   : > { %v2118_v34 = vmax.f32 %v726_v23, 0.0 }
  0xff   : > { %v663_v41 = vsel %vm658_vm2, %v652_v63, %v653_v28  ;;  %v645_v63 = vadd.f32 %v637_v44, %v410_v48  ;;  %872 = vmatpush.bf16.msrb.mxu0 %v1500_v15 }
 0x100   : > { %v709_v62 = vmul.f32 %v2123_v38, %v663_v41  ;;  %v741_v43 = vpack.c.bf16 %v2118_v34, %v2116_v33  ;;  %v774_v50 = vrot.slane %v2118_v34, 1 }
 0x102   : > { %v717_v46 = vadd.f32 %v709_v62, %v644_v36  ;;  %v787_v4 = vsel %vm658_vm2, %v773_v0, %v774_v50 }
 0x103   : > { %v789_v23 = vmul.f32 %v787_v4, %v2086_v49  ;;  %967 = vmatpush.bf16.msra.mxu0 %v1968_v1 }
 0x104   : > { %v727_v51 = vadd.f32 %v2097_v3, %v717_v46  ;;  %v565_v52 = vpop.f32.mrf.mxu3  ;;  %v588_v46 = vsel %vm585_vm1, %v579_v53, %v580_v14 }
 0x105   : > { %v654_v56 = vrot.slane %v565_v52, 1  ;;  %v639_v48 = vmul.f32 %v622_v47, %v588_v46 }
 0x106   : > { %v2139_v60 = vmax.f32 %v727_v51, 0.0 }
 0x107   : > { %v662_v8 = vsel %vm658_vm2, %v653_v28, %v654_v56  ;;  %v638_v28 = vmul.f32 %v2157_v19, %v589_v17  ;;  %968 = vmatpush.bf16.msra.mxu0 %v1983_v7  ;;  %v647_v14 = vadd.f32 %v639_v48, %v1951_v57 }
 0x108   : > { %v775_v59 = vrot.slane %v2139_v60, 1  ;;  %v710_v11 = vmul.f32 %v685_v6, %v662_v8 }
 0x109   : > { %v646_v49 = vadd.f32 %v638_v28, %v1945_v54 }
 0x10a   : > { %v718_v20 = vadd.f32 %v710_v11, %v645_v63  ;;  %v786_v22 = vsel %vm658_vm2, %v774_v50, %v775_v59 }
 0x10b   : > { %v790_v24 = vmul.f32 %v786_v22, %v1947_v55  ;;  %969 = vmatpush.bf16.msra.mxu0 %v1994_v10 }
 0x10c   : > { %v728_v36 = vadd.f32 %v2097_v3, %v718_v20  ;;  %v567_v37 = vpop.f32.mrf.mxu3 }
 0x10d   : > { %v655_v39 = vrot.slane %v567_v37, 1  ;;  %v797_v41 = vpack.c.bf16 %v790_v24, %v789_v23  ;;  %v700_v24 = vpop.permute.xlu0 %699 }
 0x10e   : > { %v2166_v29 = vmax.f32 %v728_v36, 0.0 }
 0x10f   : > { %v661_v62 = vsel %vm658_vm2, %v654_v56, %v655_v39  ;;  %1077 = vmatmul.bf16.vlgmr.msrb.gmra.mxu2 %v797_v41  ;;  %v695_v56 = vpop.permute.xlu1 %694  ;;  %970 = vmatpush.bf16.msra.mxu0 %v2009_v18  ;;  %v746_v41 = vrot.slane %v2118_v34, 7 }
 0x110   : > { %v711_v55 = vmul.f32 %v1970_v2, %v661_v62  ;;  %v742_v44 = vpack.c.bf16 %v2166_v29, %v2139_v60  ;;  %v776_v54 = vrot.slane %v2166_v29, 1  ;;  %v745_v62 = vrot.slane %v2116_v33, 7 }
 0x112   : > { %v719_v1 = vadd.f32 %v711_v55, %v646_v49  ;;  %980 = vmatmul.bf16.vlgmr.msrb.gmra.mxu1 %v742_v44  ;;  %v785_v5 = vsel %vm658_vm2, %v775_v59, %v776_v54 }
 0x113   : > { %v791_v4 = vmul.f32 %v785_v5, %v2123_v38  ;;  %971 = vmatpush.bf16.msra.mxu0 %v2030_v26  ;;  %v748_v38 = vrot.slane %v2166_v29, 7 }
 0x114   : > { %v729_v50 = vadd.f32 %v2097_v3, %v719_v1  ;;  %v570_v51 = vpop.f32.mrf.mxu3  ;;  %v759_v1 = vsel %vm585_vm1, %v745_v62, %v746_v41 }
 0x115   : > { %v656_v52 = vrot.slane %v570_v51, 1 }
 0x116   : > { %v737_v63 = vmax.f32 %v729_v50, 0.0 }
 0x117   : > { %v660_v12 = vsel %vm658_vm2, %v655_v39, %v656_v52  ;;  %972 = vmatpush.bf16.msra.mxu0 %v2047_v32 }
 0x118   : > { %v712_v53 = vmul.f32 %v695_v56, %v660_v12  ;;  %v777_v7 = vrot.slane %v737_v63, 1  ;;  %v749_v57 = vrot.slane %v737_v63, 7 }
 0x11a   : > { %v720_v8 = vadd.f32 %v712_v53, %v647_v14  ;;  %v784_v11 = vsel %vm658_vm2, %v776_v54, %v777_v7  ;;  %v756_v26 = vsel %vm585_vm1, %v748_v38, %v749_v57 }
 0x11b   : > { %v792_v10 = vmul.f32 %v784_v11, %v685_v6  ;;  %v765_v32 = vmul.f32 %v756_v26, %v2157_v19  ;;  %973 = vmatpush.bf16.msra.mxu0 %v2057_v35 }
 0x11c   : > { %v730_v15 = vadd.f32 %v2097_v3, %v720_v8  ;;  %v572_v17 = vpop.f32.mrf.mxu3 }
 0x11d   : > { %v657_v20 = vrot.slane %v572_v17, 1  ;;  %v798_v22 = vpack.c.bf16 %v792_v10, %v791_v4 }
 0x11e   : > { %v738_v23 = vmax.f32 %v730_v15, 0.0 }
 0x11f   : > { %v659_v18 = vsel %vm658_vm2, %v656_v52, %v657_v20  ;;  %v666_v59 = vsel %vm658_vm2, %v657_v20, %v650_v40  ;;  %1082 = vmatmul.bf16.gmra.mxu2 %v798_v22  ;;  %974 = vmatpush.bf16.msra.mxu0 %v2071_v42 }
 0x120   : > { %v713_v6 = vmul.f32 %v700_v24, %v659_v18  ;;  %v714_v28 = vmul.f32 %v1953_v58, %v666_v59  ;;  %v743_v36 = vpack.c.bf16 %v738_v23, %v737_v63  ;;  %v778_v37 = vrot.slane %v738_v23, 1 }
 0x121   : > { %v750_v39 = vrot.slane %v738_v23, 7  ;;  %v762_v63 = vmul.f32 %v759_v1, %v2078_v45 }
 0x122   : > { %v721_v30 = vadd.f32 %v713_v6, %v2025_v25  ;;  %v722_v40 = vadd.f32 %v714_v28, %v2032_v27  ;;  %985 = vmatmul.bf16.gmra.mxu1 %v743_v36  ;;  %v783_v29 = vsel %vm658_vm2, %v777_v7, %v778_v37 }
 0x123   : > { %v755_v49 = vsel %vm585_vm1, %v749_v57, %v750_v39  ;;  %v793_v12 = vmul.f32 %v783_v29, %v1970_v2 }
 0x124   : > { %v731_v55 = vadd.f32 %v2097_v3, %v721_v30  ;;  %v732_v44 = vadd.f32 %v2097_v3, %v722_v40  ;;  %v766_v46 = vmul.f32 %v755_v49, %v622_v47 }
 0x126   : > { %v739_v25 = vmax.f32 %v731_v55, 0.0  ;;  %v740_v27 = vmax.f32 %v732_v44, 0.0  ;;  %v771_v48 = vpack.c.bf16 %v766_v46, %v765_v32 }
 0x128   : > { %v752_v50 = vrot.slane %v740_v27, 7  ;;  %v779_v51 = vrot.slane %v739_v25, 1  ;;  %v744_v54 = vpack.c.bf16 %v740_v27, %v739_v25  ;;  %v780_v52 = vrot.slane %v740_v27, 1 }
 0x129   : > { %v751_v3 = vrot.slane %v739_v25, 7 }
 0x12a   : > { %v760_v35 = vsel %vm585_vm1, %v752_v50, %v745_v62  ;;  %v782_v19 = vsel %vm658_vm2, %v778_v37, %v779_v51  ;;  %v781_v47 = vsel %vm658_vm2, %v779_v51, %v780_v52  ;;  %v788_v14 = vsel %vm658_vm2, %v780_v52, %v773_v0  ;;  %v2263_v37 = vld [vmem:[%s2328_s4 + $0x1] ss:$0 sm:$0xff] }
 0x12b   : > { %v761_v45 = vmul.f32 %v760_v35, %v2042_v31  ;;  %v794_v2 = vmul.f32 %v782_v19, %v695_v56  ;;  %v795_v53 = vmul.f32 %v781_v47, %v700_v24  ;;  %v796_v42 = vmul.f32 %v788_v14, %v1953_v58 }
 0x12c   : > { %v753_v7 = vsel %vm585_vm1, %v751_v3, %v752_v50  ;;  %v754_v5 = vsel %vm585_vm1, %v750_v39, %v751_v3  ;;  %v747_v0 = vrot.slane %v2139_v60, 7 }
 0x12d   : > { %v769_v8 = vpack.c.bf16 %v762_v63, %v761_v45  ;;  %v799_v11 = vpack.c.bf16 %v794_v2, %v793_v12  ;;  %v800_v4 = vpack.c.bf16 %v796_v42, %v795_v53  ;;  %v767_v10 = vmul.f32 %v754_v5, %v2003_v16  ;;  %v2246_v16 = vpop.f32.mrf.mxu1 }
 0x12e   : > { %v768_v15 = vmul.f32 %v753_v7, %v2018_v21  ;;  %v757_v58 = vsel %vm585_vm1, %v747_v0, %v748_v38  ;;  %v758_v56 = vsel %vm585_vm1, %v746_v41, %v747_v0 }
 0x12f   : > { %873 = vmatmul.bf16.vlgmr.msrb.gmra.mxu0 %v769_v8  ;;  %1087 = vmatmul.bf16.gmra.mxu2 %v799_v11  ;;  %v764_v17 = vmul.f32 %v757_v58, %v1958_v61  ;;  %v763_v20 = vmul.f32 %v758_v56, %v2107_v13 }
 0x130   : > { %v772_v31 = vpack.c.bf16 %v768_v15, %v767_v10 }
 0x131   : > { %v770_v22 = vpack.c.bf16 %v764_v17, %v763_v20 }
 0x132   : > { %990 = vmatmul.bf16.gmra.mxu1 %v744_v54 }
 0x135   : > { %v2248_v21 = vpop.f32.mrf.mxu1 }
 0x13d   : > { %v437_v9 = vpop.f32.mrf.mxu1 }
 0x13f   : > { %878 = vmatmul.bf16.gmra.mxu0 %v770_v22  ;;  %1092 = vmatmul.bf16.gmra.mxu2 %v800_v4 }
 0x145   : > { %v439_v60 = vpop.f32.mrf.mxu1 }
 0x14d   : > { %v442_v57 = vpop.f32.mrf.mxu1 }
 0x14f   : > { %883 = vmatmul.bf16.gmra.mxu0 %v771_v48 }
 0x155   : > { %v444_v61 = vpop.f32.mrf.mxu1 }
 0x15d   : > { %v447_v13 = vpop.f32.mrf.mxu1 }
 0x15f   : > { %888 = vmatmul.bf16.gmra.mxu0 %v772_v31 }
 0x165   : > { %v449_v24 = vpop.f32.mrf.mxu1 }
 0x16f   : > { %975 = vmatmul.bf16.vlgmr.msra.gmra.mxu0 %v741_v43 }
 0x18f   : > { %v981_v38 = vpop.f32.mrf.mxu1 }
 0x192   : > { %v2253_v23 = vpop.f32.mrf.mxu2 }
 0x197   : > { %v983_v34 = vpop.f32.mrf.mxu1 }
 0x19a   : > { %v2255_v18 = vpop.f32.mrf.mxu2 }
 0x19f   : > { %v986_v49 = vpop.f32.mrf.mxu1 }
 0x1a2   : > { %v1083_v28 = vpop.f32.mrf.mxu2 }
 0x1a7   : > { %v988_v50 = vpop.f32.mrf.mxu1 }
 0x1aa   : > { %v1085_v39 = vpop.f32.mrf.mxu2 }
 0x1ac   : > { %v874_v59 = vpop.f32.mrf.mxu0 }
 0x1ad   : > { %v894_v58 = vadd.f32 %v874_v59, %v2246_v16 }
 0x1af   : > { %v991_v47 = vpop.f32.mrf.mxu1 }
 0x1b2   : > { %v1088_v44 = vpop.f32.mrf.mxu2 }
 0x1b4   : > { %v2257_v6 = vpop.f32.mrf.mxu0 }
 0x1b7   : > { %v993_v10 = vpop.f32.mrf.mxu1 }
 0x1ba   : > { %v1090_v54 = vpop.f32.mrf.mxu2 }
 0x1bc   : > { %v879_v36 = vpop.f32.mrf.mxu0 }
 0x1bd   : > { %v896_v33 = vadd.f32 %v879_v36, %v437_v9 }
 0x1bf   : > { %v998_v43 = vadd.f32 %v981_v38, %v896_v33 }
 0x1c1   : > { %v1100_v26 = vadd.f32 %v1083_v28, %v998_v43 }
 0x1c2   : > { %v1093_v53 = vpop.f32.mrf.mxu2 }
 0x1c3   : > { %v1110_v41 = vadd.f32 %v2263_v37, %v1100_v26 }
 0x1c4   : > { %v881_v30 = vpop.f32.mrf.mxu0 }
 0x1c5   : > { %v1118_v40 = vmax.f32 %v1110_v41, 0.0  ;;  %v897_v29 = vadd.f32 %v881_v30, %v439_v60 }
 0x1c7   : > { %1126 = vst [vmem:[%s2268_s9 + $0x10] sm:$0xff] %v1118_v40  ;;  %v999_v62 = vadd.f32 %v983_v34, %v897_v29 }
 0x1c9   : > { %v1101_v55 = vadd.f32 %v1085_v39, %v999_v62 }
 0x1ca   : > { %v1095_v31 = vpop.f32.mrf.mxu2 }
 0x1cb   : > { %v1111_v32 = vadd.f32 %v2263_v37, %v1101_v55 }
 0x1cc   : > { %v884_v46 = vpop.f32.mrf.mxu0 }
 0x1cd   : > { %v1119_v25 = vmax.f32 %v1111_v32, 0.0  ;;  %v898_v27 = vadd.f32 %v884_v46, %v442_v57  ;;  %v895_v57 = vadd.f32 %v2257_v6, %v2248_v21 }
 0x1cf   : > { %1127 = vst [vmem:[%s2268_s9 + $0x18] sm:$0xff] %v1119_v25  ;;  %v1000_v1 = vadd.f32 %v986_v49, %v898_v27 }
 0x1d1   : > { %v1102_v48 = vadd.f32 %v1088_v44, %v1000_v1 }
 0x1d3   : > { %v1112_v51 = vadd.f32 %v2263_v37, %v1102_v48 }
 0x1d4   : > { %v886_v52 = vpop.f32.mrf.mxu0 }
 0x1d5   : > { %v1120_v63 = vmax.f32 %v1112_v51, 0.0  ;;  %v899_v12 = vadd.f32 %v886_v52, %v444_v61 }
 0x1d7   : > { %1128 = vst [vmem:[%s2268_s9 + $0x20] sm:$0xff] %v1120_v63  ;;  %v1001_v3 = vadd.f32 %v988_v50, %v899_v12 }
 0x1d9   : > { %v1103_v35 = vadd.f32 %v1090_v54, %v1001_v3 }
 0x1db   : > { %v1113_v19 = vadd.f32 %v2263_v37, %v1103_v35 }
 0x1dc   : > { %v889_v14 = vpop.f32.mrf.mxu0 }
 0x1dd   : > { %v1121_v45 = vmax.f32 %v1113_v19, 0.0  ;;  %v900_v2 = vadd.f32 %v889_v14, %v447_v13 }
 0x1df   : > { %1129 = vst [vmem:[%s2268_s9 + $0x28] sm:$0xff] %v1121_v45  ;;  %v1002_v42 = vadd.f32 %v991_v47, %v900_v2 }
 0x1e1   : > { %v1104_v7 = vadd.f32 %v1093_v53, %v1002_v42 }
 0x1e3   : > { %v1114_v5 = vadd.f32 %v2263_v37, %v1104_v7 }
 0x1e4   : > { %v891_v8 = vpop.f32.mrf.mxu0 }
 0x1e5   : > { %v1122_v11 = vmax.f32 %v1114_v5, 0.0  ;;  %v901_v4 = vadd.f32 %v891_v8, %v449_v24 }
 0x1e7   : > { %1130 = vst [vmem:[%s2268_s9 + $0x30] sm:$0xff] %v1122_v11  ;;  %v1003_v15 = vadd.f32 %v993_v10, %v901_v4 }
 0x1e9   : > { %v1105_v0 = vadd.f32 %v1095_v31, %v1003_v15 }
 0x1eb   : > { %v1115_v56 = vadd.f32 %v2263_v37, %v1105_v0 }
 0x1ec   : > { %v976_v17 = vpop.f32.mrf.mxu0 }
 0x1ed   : > { %v1123_v20 = vmax.f32 %v1115_v56, 0.0  ;;  %v996_v22 = vadd.f32 %v976_v17, %v894_v58 }
 0x1ef   : > { %1131 = vst [vmem:[%s2268_s9 + $0x38] sm:$0xff] %v1123_v20  ;;  %v1098_v9 = vadd.f32 %v2253_v23, %v996_v22 }
 0x1f1   : > { %v1108_v60 = vadd.f32 %v2263_v37, %v1098_v9 }
 0x1f3   : > { %v1116_v61 = vmax.f32 %v1108_v60, 0.0 }
 0x1f4   : > { %v978_v13 = vpop.f32.mrf.mxu0 }
 0x1f5   : > { %1124 = vst [vmem:[%s2268_s9] sm:$0xff] %v1116_v61  ;;  %v997_v16 = vadd.f32 %v978_v13, %v895_v57 }
 0x1f7   : > { %v1099_v24 = vadd.f32 %v2255_v18, %v997_v16 }
 0x1f9   : > { %v1109_v23 = vadd.f32 %v2263_v37, %v1099_v24 }
 0x1fb   : > { %v1117_v59 = vmax.f32 %v1109_v23, 0.0 }
 0x1fd   : > { %1125 = vst [vmem:[%s2268_s9 + $0x8] sm:$0xff] %v1117_v59 }
 0x1fe   : > { %1700 = shalt.err (!%p1697_p8)
}
 0x1ff   : > { %s1752_s26 = smov 128   ;;  %s1753_s9 = smov 8  }
 0x200   : > { %1549 = dma.vmem_to_hbm [thread:$0]  (%p1827_p5), %s1146_s15, 1024, %s1148_s16, %s1133_s25, %s1752_s26, %s1752_s26, %s1753_s9  }
 0x201 PF: > { %p1566_p9 = scmp.ge.s32.totalorder %s1743_s24, 2  ;;  %s1162_s11 = sand.u32 1, %s1731_s21  }
 0x202   : > { %s1163_s12 = scalar_lea.sflag [#allocation4], %s1162_s11 }
 0x203   : > { %p1559_p10 = pnand %p1566_p9, %p1831_p6 }
 0x205   : > { %p1560_p11 = pneg %p1559_p10 }
 0x207   : > { %1726 = dma.done.wait (%p1560_p11), %s1163_s12, 1024  }
 0x208   : > { %1728 = vsyncadd (%p1560_p11), %s1163_s12, 4294966272  ;;  %p18_p12 = scmp.ge.s32.totalorder %s1814_s27, 4   ;;  %s2334_s21 = smov %s1735_s22 }
 0x209   : > { %s2335_s22 = smov %s1739_s23  ;;  %s2336_s23 = smov %s1825_s30 }
 0x20a   : > { %s2337_s24 = smov %s1814_s27  ;;  %20 = sbr.rel (!%p18_p12) target bundleno = 5 (0x5), region = 92 }
 0x20f   :  { %1169 = vsyncpa [#allocation3], 1 }
 0x210   :  { %1171 = vsyncpa [#allocation3 + $0x1], 1 }
 0x211   :  { %1172 = vsyncpa [#allocation6], 1 }
 0x212   :  { %1173 = vsyncpa [#allocation4], 1 }
 0x213   :  { %1175 = vsyncpa [#allocation4 + $0x1], 1 }

</bundles_post_ra>
